<compile_context>
chip_gen: v7x
topology: tpu7x:2x2x1
jax: 0.10.0
libtpu: 0.0.40
codegen_flags: <defaults>
</compile_context>

<pallas_src>
import functools

import jax
import jax.numpy as jnp
from jax.experimental import pallas as pl
from jax.experimental.pallas import tpu as pltpu


def _round_up(x, m):
    return ((x + m - 1) // m) * m


def _highway_kernel(x_ref, w_ref, b_ref, o_ref, xacc_ref):
    # One grid step = (row tile i, layer l).
    #   x_ref   : [TN, Dp]      input row tile (native dtype), DMA'd once per row tile
    #   w_ref   : [1, Dp, 2Dp]  layer-l weights (bf16), streamed per layer
    #   b_ref   : [1, 1, 2Dp]   layer-l bias (f32)
    #   o_ref   : [TN, Dp]      output row tile, written at the last layer
    #   xacc_ref: [TN, Dp] f32  carries x across layers entirely in VMEM
    l = pl.program_id(1)
    num_layers = pl.num_programs(1)
    Dp = x_ref.shape[-1]

    @pl.when(l == 0)
    def _():
        xacc_ref[...] = x_ref[...].astype(jnp.float32)

    x = xacc_ref[...]                                    # f32 carry
    # Single fused MXU pass per layer, bf16 operands, f32 accumulation.
    z = jnp.dot(x.astype(w_ref.dtype), w_ref[0],
                preferred_element_type=jnp.float32)
    z = z + b_ref[0].astype(jnp.float32)

    proj = jnp.maximum(z[:, :Dp], 0.0)                   # ReLU half   (VPU)
    g = z[:, Dp:]                                        # tile-aligned split (Dp % 128 == 0)
    # sigmoid(g) = 1 / (1 + exp(-g)) : exp + approx reciprocal both run on the EUP.
    gate = pl.reciprocal(1.0 + jnp.exp(-g), approx=True)

    # gate*x + (1-gate)*proj  ==  proj + gate*(x - proj)
    xacc_ref[...] = proj + gate * (x - proj)

    @pl.when(l == num_layers - 1)
    def _():
        o_ref[...] = xacc_ref[...].astype(o_ref.dtype)


def highway_forward(x, w_stack, b_stack, *, mxu_dtype=jnp.bfloat16, max_tile_n=4096):
    """x: [..., D] -> [..., D].  w_stack: [L, D, 2D] (f32), b_stack: [L, 1, 2D] (f32)."""
    orig_shape = x.shape
    D = orig_shape[-1]
    L = w_stack.shape[0]

    x2d = x.reshape(-1, D)
    N = x2d.shape[0]

    # --- Lane-align the feature dim (pad D -> multiple of 128). Zero padding is
    # semantics-preserving: padded proj cols are relu(0)=0 and padded x cols stay 0.
    Dp = _round_up(D, 128)
    if Dp != D:
        x2d = jnp.pad(x2d, ((0, 0), (0, Dp - D)))
        w_p = jnp.zeros((L, Dp, 2 * Dp), w_stack.dtype)
        w_p = w_p.at[:, :D, :D].set(w_stack[:, :, :D])           # proj half
        w_p = w_p.at[:, :D, Dp:Dp + D].set(w_stack[:, :, D:])    # gate half
        b_p = jnp.zeros((L, 1, 2 * Dp), b_stack.dtype)
        b_p = b_p.at[:, :, :D].set(b_stack[:, :, :D])
        b_p = b_p.at[:, :, Dp:Dp + D].set(b_stack[:, :, D:])
    else:
        w_p, b_p = w_stack, b_stack

    w_p = w_p.astype(mxu_dtype)          # bf16-native MXU on v5e/v6e/v7x
    b_p = b_p.astype(jnp.float32)        # exact bias add in the f32 accumulate

    x_item = jnp.dtype(x2d.dtype).itemsize
    w_item = jnp.dtype(w_p.dtype).itemsize

    # --- Generation-aware VMEM budget.
    try:
        vmem_cap = int(pltpu.get_tpu_info().vmem_capacity_bytes)
    except Exception:
        vmem_cap = 64 << 20              # conservative (v7x) fallback
    vmem_cap = int(0.75 * vmem_cap)      # headroom under the physical capacity

    def vmem_need(tn):
        io_tiles = 2 * tn * Dp * 2 * x_item               # double-buffered x & out tiles
        weights = 2 * (Dp * 2 * Dp * w_item + 2 * Dp * 4)  # double-buffered one layer of w/b
        scratch = tn * Dp * 4                              # f32 x accumulator
        temps = 3 * tn * 2 * Dp * 4                        # z / proj / gate temporaries
        return io_tiles + weights + scratch + temps

    # Row tile: target a ~4 MiB f32 working tile, multiple of 8 rows, shrink to fit VMEM.
    TN = max(8, min(max_tile_n, (4 << 20) // (Dp * 4), _round_up(N, 8)))
    TN = _round_up(TN, 8)
    while TN > 8 and vmem_need(TN) > vmem_cap:
        TN = max(8, _round_up(TN // 2, 8))

    Np = _round_up(N, TN)
    if Np != N:
        x2d = jnp.pad(x2d, ((0, Np - N), (0, 0)))

    vmem_limit = int(min(vmem_cap, max(int(1.5 * vmem_need(TN)), 32 << 20)))

    grid = (Np // TN, L)

    out = pl.pallas_call(
        _highway_kernel,
        out_shape=jax.ShapeDtypeStruct((Np, Dp), x.dtype),
        grid_spec=pltpu.PrefetchScalarGridSpec(
            num_scalar_prefetch=0,
            grid=grid,
            in_specs=[
                pl.BlockSpec((TN, Dp), lambda i, l: (i, 0)),            # x row tile (fetched once per i)
                pl.BlockSpec((1, Dp, 2 * Dp), lambda i, l: (l, 0, 0)),  # layer-l weights (streamed)
                pl.BlockSpec((1, 1, 2 * Dp), lambda i, l: (l, 0, 0)),   # layer-l bias
            ],
            out_specs=pl.BlockSpec((TN, Dp), lambda i, l: (i, 0)),
            scratch_shapes=[pltpu.VMEM((TN, Dp), jnp.float32)],         # f32 x carry
        ),
        compiler_params=pltpu.CompilerParams(
            dimension_semantics=("parallel", "arbitrary"),  # rows independent; layers sequential
            vmem_limit_bytes=vmem_limit,
        ),
    )(x2d, w_p, b_p)

    out = out[:N, :D]
    return out.reshape(orig_shape)


def init_highway_params(key, input_dim, num_layers):
    """Matches Highway.reset_parameters():
       PyTorch Linear weight [2D, D] ~ xavier_normal (std = sqrt(2/(D+2D)));
       bias[:D] = 0 (proj half), bias[D:] = 1 (gate half).
       Stored transposed/concatenated: w_stack [L, D, 2D], b_stack [L, 1, 2D]."""
    D = input_dim
    std = (2.0 / (D + 2 * D)) ** 0.5
    ws, bs = [], []
    for _ in range(num_layers):
        key, sub = jax.random.split(key)
        w_full = jax.random.normal(sub, (2 * D, D), dtype=jnp.float32) * std
        # y = x @ w_full.T + b ; chunk(2,-1): cols[:D] = proj, cols[D:] = gate
        ws.append(w_full.T)                                  # [D, 2D]
        bs.append(jnp.concatenate(
            [jnp.zeros((1, D), jnp.float32), jnp.ones((1, D), jnp.float32)], axis=-1))
    return jnp.stack(ws, axis=0), jnp.stack(bs, axis=0)


def highway_reference(x, w_stack, b_stack):
    """Pure-JAX f32 reference matching the PyTorch forward exactly."""
    D = x.shape[-1]
    for l in range(w_stack.shape[0]):
        z = x @ w_stack[l] + b_stack[l][0]
        proj = jnp.maximum(z[..., :D], 0.0)
        gate = jax.nn.sigmoid(z[..., D:])
        x = gate * x + (1.0 - gate) * proj
    return x


if __name__ == "__main__":
    input_dim = 32
    num_layers = 2
    batch, seq = 2, 8

    key = jax.random.PRNGKey(0)
    key, xk = jax.random.split(key)
    x = jax.random.normal(xk, (batch, seq, input_dim), dtype=jnp.float32)

    w_stack, b_stack = init_highway_params(key, input_dim, num_layers)

    run = jax.jit(functools.partial(highway_forward))
    out = jax.block_until_ready(run(x, w_stack, b_stack))

    ref = highway_reference(x.reshape(-1, input_dim), w_stack, b_stack).reshape(x.shape)
    assert out.shape == x.shape
    # bf16 MXU operands + approx-reciprocal sigmoid -> tolerance loosened vs the f32 reference.
    assert jnp.allclose(out, ref, atol=3e-2, rtol=3e-2), "mismatch vs reference"

    print("KERNEL_OK")
</pallas_src>

<mosaic_0001>
module attributes {stable_mosaic.version = 11 : i64} {
  func.func @_highway_kernel(%arg0: i32, %arg1: i32, %arg2: memref<16x128xf32, #tpu.memory_space<vmem>>, %arg3: memref<1x128x256xbf16, #tpu.memory_space<vmem>>, %arg4: memref<1x1x256xf32, #tpu.memory_space<vmem>>, %arg5: memref<16x128xf32, #tpu.memory_space<vmem>>, %arg6: memref<16x128xf32, #tpu.memory_space<vmem>>) attributes {dimension_semantics = [#tpu.dimension_semantics<parallel>, #tpu.dimension_semantics<arbitrary>], iteration_bounds = array<i64: 1, 2>, scalar_prefetch = 0 : i64, scratch_operands = 1 : i64, tpu.core_type = #tpu.core_type<tc>, window_params = [{transform_indices = @transform_0, window_bounds = array<i64: 16, 128>}, {transform_indices = @transform_1, window_bounds = array<i64: 1, 128, 256>}, {transform_indices = @transform_2, window_bounds = array<i64: 1, 1, 256>}, {transform_indices = @transform_3, window_bounds = array<i64: 16, 128>}]} {
    %c0_i32 = arith.constant 0 : i32
    %0 = arith.cmpi eq, %arg1, %c0_i32 : i32
    %1 = arith.extui %0 : i1 to i32
    %c0_i32_0 = arith.constant 0 : i32
    %2 = arith.cmpi ne, %1, %c0_i32_0 : i32
    scf.if %2 {
      %c0_14 = arith.constant 0 : index
      %c0_15 = arith.constant 0 : index
      %29 = vector.load %arg2[%c0_14, %c0_15] : memref<16x128xf32, #tpu.memory_space<vmem>>, vector<16x128xf32>
      %c0_16 = arith.constant 0 : index
      %c0_17 = arith.constant 0 : index
      %30 = vector.load %arg6[%c0_16, %c0_17] : memref<16x128xf32, #tpu.memory_space<vmem>>, vector<16x128xf32>
      tpu.vector_store %arg6[%c0_16, %c0_17], %29 {strides = array<i32>} : memref<16x128xf32, #tpu.memory_space<vmem>>, vector<16x128xf32>,
    } else {
    }
    %c0 = arith.constant 0 : index
    %c0_1 = arith.constant 0 : index
    %3 = vector.load %arg6[%c0, %c0_1] : memref<16x128xf32, #tpu.memory_space<vmem>>, vector<16x128xf32>
    %4 = arith.truncf %3 : vector<16x128xf32> to vector<16x128xbf16>
    %c0_2 = arith.constant 0 : index
    %c0_3 = arith.constant 0 : index
    %c0_4 = arith.constant 0 : index
    %5 = vector.load %arg3[%c0_2, %c0_3, %c0_4] : memref<1x128x256xbf16, #tpu.memory_space<vmem>>, vector<1x128x256xbf16>
    %6 = vector.shape_cast %5 : vector<1x128x256xbf16> to vector<128x256xbf16>
    %cst = arith.constant dense<0.000000e+00> : vector<16x256xf32>
    %7 = tpu.matmul %4, %6, %cst {dimension_numbers = #tpu.dot_dimension_numbers<[1], [0], [0], [1], [0, 0, 1, 1], [], []>} : vector<16x128xbf16>, vector<128x256xbf16>, vector<16x256xf32> -> vector<16x256xf32>
    %c0_5 = arith.constant 0 : index
    %c0_6 = arith.constant 0 : index
    %c0_7 = arith.constant 0 : index
    %8 = vector.load %arg4[%c0_5, %c0_6, %c0_7] : memref<1x1x256xf32, #tpu.memory_space<vmem>>, vector<1x1x256xf32>
    %9 = vector.shape_cast %8 : vector<1x1x256xf32> to vector<1x256xf32>
    %10 = vector.broadcast %9 : vector<1x256xf32> to vector<16x256xf32>
    %11 = arith.addf %7, %10 : vector<16x256xf32>
    %12 = vector.extract_strided_slice %11 {offsets = [0, 0], sizes = [16, 128], strides = [1, 1]} : vector<16x256xf32> to vector<16x128xf32>
    %cst_8 = arith.constant 0.000000e+00 : f32
    %13 = vector.broadcast %cst_8 : f32 to vector<16x128xf32>
    %14 = arith.maximumf %12, %13 : vector<16x128xf32>
    %15 = vector.extract_strided_slice %11 {offsets = [0, 128], sizes = [16, 128], strides = [1, 1]} : vector<16x256xf32> to vector<16x128xf32>
    %cst_9 = arith.constant 0.000000e+00 : f32
    %16 = vector.broadcast %cst_9 : f32 to vector<16x128xf32>
    %17 = arith.subf %16, %15 : vector<16x128xf32>
    %18 = math.exp %17 : vector<16x128xf32>
    %cst_10 = arith.constant 1.000000e+00 : f32
    %19 = vector.broadcast %cst_10 : f32 to vector<16x128xf32>
    %20 = arith.addf %19, %18 : vector<16x128xf32>
    %21 = tpu.reciprocal %20 {approx = true} : vector<16x128xf32> -> vector<16x128xf32>
    %22 = arith.subf %3, %14 : vector<16x128xf32>
    %23 = arith.mulf %21, %22 : vector<16x128xf32>
    %24 = arith.addf %14, %23 : vector<16x128xf32>
    %c0_11 = arith.constant 0 : index
    %c0_12 = arith.constant 0 : index
    %25 = vector.load %arg6[%c0_11, %c0_12] : memref<16x128xf32, #tpu.memory_space<vmem>>, vector<16x128xf32>
    tpu.vector_store %arg6[%c0_11, %c0_12], %24 {strides = array<i32>} : memref<16x128xf32, #tpu.memory_space<vmem>>, vector<16x128xf32>,
    %c1_i32 = arith.constant 1 : i32
    %26 = arith.cmpi eq, %arg1, %c1_i32 : i32
    %27 = arith.extui %26 : i1 to i32
    %c0_i32_13 = arith.constant 0 : i32
    %28 = arith.cmpi ne, %27, %c0_i32_13 : i32
    scf.if %28 {
      %c0_14 = arith.constant 0 : index
      %c0_15 = arith.constant 0 : index
      %29 = vector.load %arg6[%c0_14, %c0_15] : memref<16x128xf32, #tpu.memory_space<vmem>>, vector<16x128xf32>
      %c0_16 = arith.constant 0 : index
      %c0_17 = arith.constant 0 : index
      %30 = vector.load %arg5[%c0_16, %c0_17] : memref<16x128xf32, #tpu.memory_space<vmem>>, vector<16x128xf32>
      tpu.vector_store %arg5[%c0_16, %c0_17], %29 {strides = array<i32>} : memref<16x128xf32, #tpu.memory_space<vmem>>, vector<16x128xf32>,
    } else {
    }
    return
  }
  func.func @transform_0(%arg0: i32, %arg1: i32) -> (i32, i32) {
    %c0_i32 = arith.constant 0 : i32
    %c0_i32_0 = arith.constant 0 : i32
    return %arg0, %c0_i32 : i32, i32
  }
  func.func @transform_1(%arg0: i32, %arg1: i32) -> (i32, i32, i32) {
    %c0_i32 = arith.constant 0 : i32
    %c0_i32_0 = arith.constant 0 : i32
    %c0_i32_1 = arith.constant 0 : i32
    return %arg1, %c0_i32, %c0_i32_0 : i32, i32, i32
  }
  func.func @transform_2(%arg0: i32, %arg1: i32) -> (i32, i32, i32) {
    %c0_i32 = arith.constant 0 : i32
    %c0_i32_0 = arith.constant 0 : i32
    %c0_i32_1 = arith.constant 0 : i32
    return %arg1, %c0_i32, %c0_i32_0 : i32, i32, i32
  }
  func.func @transform_3(%arg0: i32, %arg1: i32) -> (i32, i32) {
    %c0_i32 = arith.constant 0 : i32
    %c0_i32_0 = arith.constant 0 : i32
    return %arg0, %c0_i32 : i32, i32
  }
}

</mosaic_0001>

<bundles_post_ra>
// kernel: highway_forward.1
= control target key start
LH: loop header
LB: loop body
LE: loop exit
PB: predicated region body
PF: predicated region fallthrough
CT: control target
= control target key end

     0   :  { %s636_s12 = smov 0   ;;  %s638_s13 = smov 0   ;;  %s708_s0 = inlined_call_operand.vmem [shape: f32[16,128], index: 0, kind: input, shape index: {}]   ;;  %s709_s1 = inlined_call_operand.vmem [shape: bf16[2,128,256], index: 1, kind: input, shape index: {}]   ;;  %s710_s2 = inlined_call_operand.vmem [shape: f32[2,1,256], index: 2, kind: input, shape index: {}]   ;;  %s711_s3 = inlined_call_operand.vmem [shape: f32[16,128], index: 3, kind: output, shape index: {}]  }
   0x1   :  { %s640_s14 = smov 0  }
   0x2 LB: > { %s22_s15 = sadd.s32 1, %s609_s13  ;;  %p507_p0 = scmp.ge.s32.totalorder %s613_s14, 1  ;;  %s613_s14 = sphi %s640_s14, %s13_s14   ;;  %s609_s13 = sphi %s638_s13, %s713_s13   ;;  %s605_s12 = sphi %s636_s12, %s712_s12  }
   0x3   : > { %p23_p1 = scmp.ge.s32.totalorder %s22_s15, 2  ;;  %p169_p2 = scmp.lt.s32.totalorder %s613_s14, 3 }
   0x5   : > { %s715_s15 = smov (%p23_p1, %s22_s15), 0  ;;  %p170_p3 = pnand %p507_p0, %p169_p2 }
   0x6   : > { %p208_p4 = scmp.lt.s32.totalorder (!%p170_p3), %s605_s12, 1  ;;  %p511_p5 = scmp.ne.s32.totalorder (!%p170_p3), %s605_s12, 0 }
   0x7   : > { %173 = sbr.rel (%p170_p3) target bundleno = 313 (0x139), region = 32 }
   0xe   : > { %s209_s16 = scalar_select %p208_p4, %s605_s12, 1 }
   0xf   : > { %227 = sbr.rel (%p511_p5) target bundleno = 22 (0x16), region = 36  ;;  %v228_v0 = vld [vmem:[%s708_s0] sm:$0xff] (!%p511_p5)  ;;  %v229_v1 = vld [vmem:[%s708_s0 + $0x8] sm:$0xff] (!%p511_p5) }
  0x10   : > { %s533_s17 = sshll.u32 %s209_s16, 7  ;;  %s510_s18 = sshll.u32 %s209_s16, 1  ;;  %230 = vst [vmem:[#allocation2] sm:$0xff] (!%p511_p5), %v228_v0  ;;  %231 = vst [vmem:[#allocation2 + $0x8] sm:$0xff] (!%p511_p5), %v229_v1 }
  0x11   : > { %s661_s21 = scalar_lea.vmem %s709_s1, %s533_s17  ;;  %s666_s24 = scalar_lea.vmem %s710_s2, %s510_s18 }
  0x16 PF: > { %v559_v2 = vld [vmem:[%s661_s21 + $0x4] ss:$8 sps:$4 sm:$0xff]   ;;  %v561_v3 = vld [vmem:[%s661_s21] ss:$8 sps:$4 sm:$0xff]   ;;  %v615_v4 = vmov 0   ;;  %v253_v22 = vlaneseq  ;;  %p528_p6 = scmp.ne.s32.totalorder %s605_s12, 1 }
  0x17   : > { %375 = vmatprep.mubr.bf16.mxu0 %v615_v4  ;;  %343 = vmatprep.subr.bf16.mxu0 %v559_v2  ;;  %v562_v5 = vld [vmem:[%s661_s21 + $0x14] ss:$8 sps:$4 sm:$0xff]   ;;  %v564_v6 = vld [vmem:[%s661_s21 + $0x10] ss:$8 sps:$4 sm:$0xff]   ;;  %v565_v7 = vld [vmem:[%s661_s21 + $0x24] ss:$8 sps:$4 sm:$0xff]  }
  0x18   : > { %344 = vmatpush1.bf16.msra.mxu0 %v561_v3  ;;  %v567_v8 = vld [vmem:[%s661_s21 + $0x20] ss:$8 sps:$4 sm:$0xff]   ;;  %v568_v9 = vld [vmem:[%s661_s21 + $0x34] ss:$8 sps:$4 sm:$0xff]   ;;  %v570_v10 = vld [vmem:[%s661_s21 + $0x30] ss:$8 sps:$4 sm:$0xff]  }
  0x19   : > { %345 = vmatprep.subr.bf16.mxu0 %v562_v5  ;;  %v571_v11 = vld [vmem:[%s661_s21 + $0x44] ss:$8 sps:$4 sm:$0xff]   ;;  %v573_v12 = vld [vmem:[%s661_s21 + $0x40] ss:$8 sps:$4 sm:$0xff]   ;;  %v574_v13 = vld [vmem:[%s661_s21 + $0x54] ss:$8 sps:$4 sm:$0xff]  }
  0x1a   : > { %v576_v14 = vld [vmem:[%s661_s21 + $0x50] ss:$8 sps:$4 sm:$0xff]   ;;  %v577_v15 = vld [vmem:[%s661_s21 + $0x64] ss:$8 sps:$4 sm:$0xff]   ;;  %v579_v16 = vld [vmem:[%s661_s21 + $0x60] ss:$8 sps:$4 sm:$0xff]  }
  0x1b   : > { %v580_v17 = vld [vmem:[%s661_s21 + $0x74] ss:$8 sps:$4 sm:$0xff]   ;;  %v582_v18 = vld [vmem:[%s661_s21 + $0x70] ss:$8 sps:$4 sm:$0xff]   ;;  %v232_v19 = vld [vmem:[#allocation2] sm:$0xff]  ;;  %v254_v23 = vshrl.u32 %v253_v22, 7 }
  0x1c   : > { %346 = vmatpush1.bf16.msra.mxu0 %v564_v6  ;;  %v233_v20 = vld [vmem:[#allocation2 + $0x8] sm:$0xff]  ;;  %v251_v25 = vld [vmem:[%s666_s24] sm:$0x3] }
  0x1d   : > { %347 = vmatprep.subr.bf16.mxu0 %v565_v7  ;;  %v234_v21 = vpack.c.bf16 %v233_v20, %v232_v19  ;;  %v259_v24 = vsub.s32 1, %v254_v23  ;;  %v255_v37 = vsub.s32 0, %v254_v23 }
  0x1f   : > { %v260_v26 = vrot.slane %v251_v25, %v259_v24  ;;  %v256_v39 = vrot.slane %v251_v25, %v255_v37 }
  0x20   : > { %348 = vmatpush1.bf16.msra.mxu0 %v567_v8 }
  0x21   : > { %349 = vmatprep.subr.bf16.mxu0 %v568_v9 }
  0x24   : > { %350 = vmatpush1.bf16.msra.mxu0 %v570_v10 }
  0x25   : > { %351 = vmatprep.subr.bf16.mxu0 %v571_v11 }
  0x28   : > { %352 = vmatpush1.bf16.msra.mxu0 %v573_v12 }
  0x29   : > { %353 = vmatprep.subr.bf16.mxu0 %v574_v13 }
  0x2c   : > { %354 = vmatpush1.bf16.msra.mxu0 %v576_v14 }
  0x2d   : > { %355 = vmatprep.subr.bf16.mxu0 %v577_v15 }
  0x30   : > { %356 = vmatpush1.bf16.msra.mxu0 %v579_v16 }
  0x31   : > { %357 = vmatprep.subr.bf16.mxu0 %v580_v17 }
  0x34   : > { %358 = vmatpush1.bf16.msra.mxu0 %v582_v18 }
  0x37   : > { %376 = vmatmul.mubr.bf16.vlgmr.msra.gmra.mrb[0].mxu0 %v234_v21 }
 0x10a   : > { %v377_v27 = vpop.f32.mrb[0].mxu0 }
 0x10b   : > { %v379_v28 = vpop.f32.mrb[1].mxu0  ;;  %v378_v43 = vadd.f32 %v377_v27, %v256_v39 }
 0x10c   : > { %v380_v29 = vadd.f32 %v379_v28, %v260_v26  ;;  %v381_v30 = vpop.f32.mrb[2].mxu0 }
 0x10d   : > { %v383_v31 = vpop.f32.mrb[3].mxu0  ;;  %v382_v44 = vadd.f32 %v381_v30, %v256_v39  ;;  %v386_v45 = vmax.f32 %v378_v43, 0.0 }
 0x10e   : > { %v388_v32 = vsub.f32 0.0, %v380_v29  ;;  %v384_v33 = vadd.f32 %v383_v31, %v260_v26 }
 0x10f   : > { %v387_v46 = vmax.f32 %v382_v44, 0.0  ;;  %v398_v47 = vsub.f32 %v232_v19, %v386_v45 }
 0x110   : > { %v390_v34 = vmul.f32 1.442695, %v388_v32  ;;  %v389_v35 = vsub.f32 0.0, %v384_v33 }
 0x111   : > { %v399_v50 = vsub.f32 %v233_v20, %v387_v46 }
 0x112   : > { %583 = vpow2.f32 %v390_v34  ;;  %v392_v36 = vmul.f32 1.442695, %v389_v35 }
 0x114   : > { %585 = vpow2.f32 %v392_v36 }
 0x11c   : > { %v584_v38 = vpop.eup %583 }
 0x11d   : > { %v394_v40 = vadd.f32 1.0, %v584_v38 }
 0x11e   : > { %v586_v41 = vpop.eup %585 }
 0x11f   : > { %587 = vrcp.f32 %v394_v40  ;;  %v395_v42 = vadd.f32 1.0, %v586_v41 }
 0x121   : > { %589 = vrcp.f32 %v395_v42 }
 0x129   : > { %v588_v48 = vpop.eup %587 }
 0x12a   : > { %v400_v49 = vmul.f32 %v588_v48, %v398_v47  ;;  %409 = sbr.rel (%p528_p6) target bundleno = 313 (0x139), region = 40 }
 0x12b   : > { %v590_v51 = vpop.eup %589 }
 0x12c   : > { %v402_v52 = vadd.f32 %v400_v49, %v386_v45  ;;  %v401_v53 = vmul.f32 %v590_v51, %v399_v50 }
 0x12e   : > { %404 = vst [vmem:[#allocation2] sm:$0xff] %v402_v52  ;;  %v403_v54 = vadd.f32 %v401_v53, %v387_v46 }
 0x130   : > { %405 = vst [vmem:[#allocation2 + $0x8] sm:$0xff] %v403_v54 }
 0x135   : > { %v410_v55 = vld [vmem:[#allocation2] sm:$0xff] }
 0x136   : > { %412 = vst [vmem:[%s711_s3] sm:$0xff] %v410_v55 }
 0x137   : > { %v411_v56 = vld [vmem:[#allocation2 + $0x8] sm:$0xff] }
 0x138   : > { %413 = vst [vmem:[%s711_s3 + $0x8] sm:$0xff] %v411_v56 }
 0x139 PF: > { %s13_s14 = sadd.s32 1, %s613_s14   ;;  %s712_s12 = smov %s609_s13 }
 0x13a   : > { %p10_p7 = scmp.ge.s32.totalorder %s13_s14, 4   ;;  %s713_s13 = smov %s715_s15 }
 0x13c   :  { %12 = sbr.rel (!%p10_p7) target bundleno = 2 (0x2), region = 76 }

</bundles_post_ra>
